<compile_context>
chip_gen: v7x
topology: tpu7x:2x2x1
jax: 0.10.0
libtpu: 0.0.40
codegen_flags: <defaults>
</compile_context>

<pallas_src>
import functools

import jax
import jax.numpy as jnp
from jax.experimental import pallas as pl
from jax.experimental.pallas import tpu as pltpu


NEG_MASK = -2.3819763e38        # same additive mask value as the torch module
NEG_HALF = NEG_MASK * 0.5       # "this row has not seen an unmasked key yet"


def _pick_tile(dim: int, target: int, multiple: int) -> int:
    """Largest t <= target with dim % t == 0 and t % multiple == 0, else dim."""
    for t in range(min(dim, target), 0, -1):
        if dim % t == 0 and t % multiple == 0:
            return t
    return dim  # full dim is always a legal block size


# -------------------- per-generation VMEM / tile selection -------------------

def _vmem_capacity_bytes() -> int:
    try:
        info = pltpu.get_tpu_info()
        return int(getattr(info, "vmem_capacity_bytes", 64 * 1024 * 1024))
    except Exception:
        # Unknown platform: assume the smallest (v7x, 64 MiB) and stay safe.
        return 64 * 1024 * 1024


_VMEM_CAP = _vmem_capacity_bytes()
_BIG_VMEM = _VMEM_CAP >= 100 * 1024 * 1024        # v5e/v6e: 128 MiB; v7x: 64 MiB
_MM_VMEM_LIMIT = (96 if _BIG_VMEM else 48) * 1024 * 1024
_ATTN_VMEM_LIMIT = (64 if _BIG_VMEM else 40) * 1024 * 1024
_MM_TILE_MN = 512 if _BIG_VMEM else 256
_MM_TILE_K = 512


# ------------------------- tiled matmul (projections) ------------------------


def _matmul_kernel(x_ref, w_ref, o_ref, acc_ref):
    @pl.when(pl.program_id(2) == 0)
    def _init():
        acc_ref[...] = jnp.zeros_like(acc_ref)

    # bf16 operands (if caller stores bf16) -> MXU native, f32 accumulation.
    acc_ref[...] += jnp.dot(
        x_ref[...], w_ref[...], preferred_element_type=jnp.float32
    )

    @pl.when(pl.program_id(2) == pl.num_programs(2) - 1)
    def _done():
        o_ref[...] = acc_ref[...].astype(o_ref.dtype)


def matmul_pallas(x2d, w, *, tm_target=None, tn_target=None, tk_target=None):
    """x2d: (M, K) @ w: (K, N) -> (M, N).  Tiled, pipelined, f32 accumulate."""
    M, K = x2d.shape
    K2, N = w.shape
    assert K == K2
    tm = _pick_tile(M, tm_target or _MM_TILE_MN, 8)
    tn = _pick_tile(N, tn_target or _MM_TILE_MN, 128)
    tk = _pick_tile(K, tk_target or _MM_TILE_K, 128)
    grid = (M // tm, N // tn, K // tk)

    return pl.pallas_call(
        _matmul_kernel,
        out_shape=jax.ShapeDtypeStruct((M, N), x2d.dtype),
        grid_spec=pltpu.PrefetchScalarGridSpec(
            num_scalar_prefetch=0,
            grid=grid,
            in_specs=[
                pl.BlockSpec((tm, tk), lambda i, j, k: (i, k)),
                pl.BlockSpec((tk, tn), lambda i, j, k: (k, j)),
            ],
            out_specs=pl.BlockSpec((tm, tn), lambda i, j, k: (i, j)),
            scratch_shapes=[pltpu.VMEM((tm, tn), jnp.float32)],
        ),
        compiler_params=pltpu.CompilerParams(
            dimension_semantics=("parallel", "parallel", "arbitrary"),
            vmem_limit_bytes=_MM_VMEM_LIMIT,
        ),
    )(x2d, w)


# ---------------------- flash attention (GQA, sliding window) ----------------


def _flash_attn_kernel(
    q_ref, kv_ref, o_ref, q_sc, m_sc, l_sc, acc_sc, *,
    scaling, softcapping, sliding_window, tq, tkv, q_per_kv, head_dim,
    kv_tiles_total,
):
    i = pl.program_id(0)          # q tile
    j = pl.program_id(3)          # step inside the kv band
    n_band = pl.num_programs(3)

    q_lo = i * tq
    q_hi = q_lo + tq - 1
    if sliding_window is not None:
        j_start = jnp.maximum(0, (q_lo - (sliding_window - 1)) // tkv)
    else:
        j_start = 0
    j_abs = j_start + j           # absolute kv tile index (unclamped)
    k_lo = j_abs * tkv

    @pl.when(j == 0)
    def _init():
        m_sc[...] = jnp.full_like(m_sc, -jnp.inf)
        l_sc[...] = jnp.zeros_like(l_sc)
        acc_sc[...] = jnp.zeros_like(acc_sc)
        # Hoist q-tile-invariant work out of the kv loop: the per-head q
        # slabs are sliced (and kept in input dtype for the MXU) exactly once.
        qb = q_ref[0]                                      # (tq, q_per_kv*HD)
        for h in range(q_per_kv):
            q_sc[h] = qb[:, h * head_dim:(h + 1) * head_dim]

    # Band tiles past the causal frontier / past the sequence end are skipped
    # (the index_map clamps their DMA in-bounds; we never use their data).
    needed = jnp.logical_and(k_lo <= q_hi, j_abs < kv_tiles_total)

    @pl.when(needed)
    def _tile():
        kvb = kv_ref[0]                                    # (tkv, 2*HD)
        k = kvb[:, :head_dim]
        v = kvb[:, head_dim:]

        # Causal + sliding-window mask, built from small iotas and shared by
        # every head of the GQA group (no HBM mask traffic).
        q_pos = q_lo + jax.lax.broadcasted_iota(jnp.int32, (tq, 1), 0)
        k_pos = k_lo + jax.lax.broadcasted_iota(jnp.int32, (1, tkv), 1)
        allowed = k_pos <= q_pos                           # (tq, tkv) causal
        if sliding_window is not None:
            allowed = jnp.logical_and(
                allowed, k_pos >= q_pos - (sliding_window - 1)
            )

        for h in range(q_per_kv):                          # static unroll
            s = jax.lax.dot_general(
                q_sc[h], k, (((1,), (1,)), ((), ())),
                preferred_element_type=jnp.float32,
            )                                              # (tq, tkv) f32
            s = s * scaling
            if softcapping is not None:
                s = jnp.tanh(s * (1.0 / softcapping)) * softcapping
            s = jnp.where(allowed, s, NEG_MASK)

            # Online softmax in f32.
            m_prev = m_sc[h]
            m_new = jnp.maximum(m_prev, jnp.max(s, axis=-1, keepdims=True))
            alpha = jnp.exp(m_prev - m_new)
            p = jnp.exp(s - m_new)
            # Rows that are still fully masked must not accumulate exp(0)=1.
            p = jnp.where(m_new > NEG_HALF, p, 0.0)
            l_sc[h] = alpha * l_sc[h] + jnp.sum(p, axis=-1, keepdims=True)
            acc_sc[h] = alpha * acc_sc[h] + jnp.dot(
                p.astype(v.dtype), v, preferred_element_type=jnp.float32
            )
            m_sc[h] = m_new

    @pl.when(j == n_band - 1)
    def _finalize():
        slabs = []
        for h in range(q_per_kv):
            inv_l = pl.reciprocal(l_sc[h], approx=True)    # EUP, ~free
            slabs.append(acc_sc[h] * inv_l)
        # One lane-dense (tq, q_per_kv*HD) store, head-major columns.
        o_ref[0] = jnp.concatenate(slabs, axis=-1).astype(o_ref.dtype)


def attention_pallas(
    q_arr, kv_arr, *, num_q_heads, num_kv_heads, head_dim, kv_block_offset,
    scaling, softcapping, sliding_window, block_q=128, block_kv=128,
):
    """q_arr: (B, S, >=NH*HD) with head-major query columns starting at col 0.
    kv_arr: (B, S, ...) with per-group [K_g | V_g] slabs starting at column
    block `kv_block_offset` (block width 2*head_dim).  Returns (B, S, NH*HD)
    in head-major column order (torch layout for the output projection)."""
    B, S, _ = q_arr.shape
    assert kv_arr.shape[0] == B and kv_arr.shape[1] == S
    q_per_kv = num_q_heads // num_kv_heads
    group_w = q_per_kv * head_dim
    kv_w = 2 * head_dim
    assert group_w % 128 == 0 and kv_w % 128 == 0, (
        "q_per_kv*head_dim and 2*head_dim must be multiples of 128 lanes")

    tq = _pick_tile(S, block_q, 8)
    tkv = _pick_tile(S, block_kv, 128)   # lane dim of the scores: 128-multiple
    n_q_tiles = S // tq
    kv_tiles_total = S // tkv

    # kv grid axis only spans the causal / sliding-window band.
    if sliding_window is None:
        n_band = kv_tiles_total
    else:
        n_band = 1
        for qi in range(n_q_tiles):
            q_lo = qi * tq
            j_s = max(0, (q_lo - (sliding_window - 1)) // tkv)
            j_e = (q_lo + tq - 1) // tkv
            n_band = max(n_band, j_e - j_s + 1)
        n_band = min(n_band, kv_tiles_total)

    def q_index_map(i, b, g, j):
        return (b, i, g)

    def kv_index_map(i, b, g, j):
        if sliding_window is not None:
            j_start = jnp.maximum(0, (i * tq - (sliding_window - 1)) // tkv)
        else:
            j_start = 0
        j_abs = jnp.minimum(j_start + j, kv_tiles_total - 1)  # in-bounds clamp
        return (b, j_abs, kv_block_offset + g)

    def out_index_map(i, b, g, j):
        return (b, i, g)

    kernel = functools.partial(
        _flash_attn_kernel,
        scaling=scaling, softcapping=softcapping, sliding_window=sliding_window,
        tq=tq, tkv=tkv, q_per_kv=q_per_kv, head_dim=head_dim,
        kv_tiles_total=kv_tiles_total,
    )

    grid = (n_q_tiles, B, num_kv_heads, n_band)

    return pl.pallas_call(
        kernel,
        out_shape=jax.ShapeDtypeStruct((B, S, num_q_heads * head_dim),
                                       q_arr.dtype),
        grid_spec=pltpu.PrefetchScalarGridSpec(
            num_scalar_prefetch=0,
            grid=grid,
            in_specs=[
                pl.BlockSpec((1, tq, group_w), q_index_map),
                pl.BlockSpec((1, tkv, kv_w), kv_index_map),
                # TODO(synk): pl.Buffered(3) on the KV spec if profiling shows
                # exposed DMA (kwarg availability is version-dependent).
            ],
            out_specs=pl.BlockSpec((1, tq, group_w), out_index_map),
            scratch_shapes=[
                pltpu.VMEM((q_per_kv, tq, head_dim), q_arr.dtype),  # q slabs
                pltpu.VMEM((q_per_kv, tq, 1), jnp.float32),         # running max
                pltpu.VMEM((q_per_kv, tq, 1), jnp.float32),         # running denom
                pltpu.VMEM((q_per_kv, tq, head_dim), jnp.float32),  # accumulator
            ],
        ),
        compiler_params=pltpu.CompilerParams(
            # q-tiles lead so B=1 serving shapes still fill both v7x cores.
            dimension_semantics=("parallel", "parallel", "parallel", "arbitrary"),
            vmem_limit_bytes=_ATTN_VMEM_LIMIT,
        ),
    )(q_arr, kv_arr)


# --------------------------- Module-level wrapper ---------------------------


class Gemma2AttentionPallas:
    """Forward-pass equivalent of torchtune Gemma2Attention (default causal
    mask, optional sliding window + softcapping, no dropout, no kv-cache).

    TODO(synk): pos_embeddings (RoPE), q_norm/k_norm, KVCache streaming decode
    (y=None), user-supplied boolean masks and BlockMask/flex-attention are not
    implemented here (they are None / defaults in the mirrored config)."""

    def __init__(
        self,
        *,
        embed_dim,
        num_heads,
        num_kv_heads,
        head_dim,
        sliding_window_size=None,
        softcapping=50.0,
        query_pre_attn_scalar=None,
        key=None,
        dtype=jnp.bfloat16,
    ):
        assert num_heads % num_kv_heads == 0
        assert embed_dim % num_heads == 0
        # Fused-activation KV column-block offset needs (NH*HD) % (2*HD) == 0.
        assert num_heads % 2 == 0, "TODO(synk): odd num_heads not supported"
        self.embed_dim = embed_dim
        self.num_heads = num_heads
        self.num_kv_heads = num_kv_heads
        self.head_dim = head_dim
        self.sliding_window_size = sliding_window_size
        self.softcapping = softcapping
        if query_pre_attn_scalar is not None:
            self.scaling = query_pre_attn_scalar ** (-0.5)
        else:
            self.scaling = head_dim ** (-0.5)

        if key is None:
            key = jax.random.PRNGKey(0)
        kq, kk, kv, ko = jax.random.split(key, 4)
        s = 0.02
        # Linear weights stored as (in_features, out_features); no bias.
        self.wq = (s * jax.random.normal(kq, (embed_dim, num_heads * head_dim))).astype(dtype)
        self.wk = (s * jax.random.normal(kk, (embed_dim, num_kv_heads * head_dim))).astype(dtype)
        self.wv = (s * jax.random.normal(kv, (embed_dim, num_kv_heads * head_dim))).astype(dtype)
        self.wo = (s * jax.random.normal(ko, (num_heads * head_dim, embed_dim))).astype(dtype)

        # Fused projection weight with attention-friendly column layout:
        #   [ Q_head0 .. Q_head{NH-1} | K_0 V_0 | K_1 V_1 | ... ]
        # so the attention kernel reads q / (K_g, V_g) as contiguous,
        # lane-aligned column blocks of ONE activation (no XLA slices or
        # transposes anywhere on the activation path).
        kv_cols = []
        for g in range(num_kv_heads):
            kv_cols.append(self.wk[:, g * head_dim:(g + 1) * head_dim])
            kv_cols.append(self.wv[:, g * head_dim:(g + 1) * head_dim])
        self.w_qkv = jnp.concatenate([self.wq] + kv_cols, axis=1)
        self.w_kv = jnp.concatenate(kv_cols, axis=1)   # cross-attention path

    def __call__(self, x, y=None):
        b, s_x, d = x.shape
        nh, nkv, hd = self.num_heads, self.num_kv_heads, self.head_dim

        if y is None or y is x:
            # Self-attention: one fused, tiled QKV projection; attention reads
            # its q / kv column blocks straight from the fused activation.
            qkv = matmul_pallas(x.reshape(b * s_x, d), self.w_qkv)
            qkv = qkv.reshape(b, s_x, -1)                  # free reshape
            attn = attention_pallas(
                qkv, qkv,
                num_q_heads=nh, num_kv_heads=nkv, head_dim=hd,
                kv_block_offset=(nh * hd) // (2 * hd),
                scaling=self.scaling,
                softcapping=self.softcapping,
                sliding_window=self.sliding_window_size,
            )
        else:
            # Cross-attention (default-causal path, s_y == s_x only).
            s_y = y.shape[1]
            assert s_y == s_x, "TODO(synk): cross-attention with s_y != s_x"
            q3 = matmul_pallas(x.reshape(b * s_x, d), self.wq).reshape(b, s_x, -1)
            kv3 = matmul_pallas(y.reshape(b * s_y, d), self.w_kv).reshape(b, s_y, -1)
            attn = attention_pallas(
                q3, kv3,
                num_q_heads=nh, num_kv_heads=nkv, head_dim=hd,
                kv_block_offset=0,
                scaling=self.scaling,
                softcapping=self.softcapping,
                sliding_window=self.sliding_window_size,
            )

        # attn is (b, s, NH*HD) head-major == torch's transpose+view layout.
        out = matmul_pallas(attn.reshape(b * s_x, nh * hd), self.wo)
        return out.reshape(b, s_x, self.embed_dim)

    # ---------------------- pure-JAX reference (correctness) ----------------

    def _build_mask(self, s):
        i = jnp.arange(s)[:, None]
        j = jnp.arange(s)[None, :]
        mask = jnp.where(j <= i, 0.0, NEG_MASK).astype(jnp.float32)
        if self.sliding_window_size is not None:
            w = self.sliding_window_size
            sliding = jnp.logical_and(j >= i - (w - 1), j <= i + (w - 1))
            mask = jnp.where(sliding, mask, NEG_MASK)
        return mask

    def reference(self, x, y=None):
        if y is None:
            y = x
        b, s_x, d = x.shape
        s_y = y.shape[1]
        nh, nkv, hd = self.num_heads, self.num_kv_heads, self.head_dim
        q_per_kv = nh // nkv
        f32 = jnp.float32
        dt = x.dtype

        q = jnp.dot(x.reshape(b * s_x, d), self.wq, preferred_element_type=f32).astype(dt)
        k = jnp.dot(y.reshape(b * s_y, d), self.wk, preferred_element_type=f32).astype(dt)
        v = jnp.dot(y.reshape(b * s_y, d), self.wv, preferred_element_type=f32).astype(dt)
        q = q.reshape(b, s_x, nh, hd).transpose(0, 2, 1, 3)
        k = k.reshape(b, s_y, nkv, hd).transpose(0, 2, 1, 3)
        v = v.reshape(b, s_y, nkv, hd).transpose(0, 2, 1, 3)
        k = jnp.repeat(k, q_per_kv, axis=1)
        v = jnp.repeat(v, q_per_kv, axis=1)

        scores = jnp.einsum("bhqd,bhkd->bhqk",
                            q.astype(f32) * self.scaling, k.astype(f32))
        if self.softcapping is not None:
            scores = jnp.tanh(scores / self.softcapping) * self.softcapping
        scores = scores + self._build_mask(s_x)[None, None]
        p = jax.nn.softmax(scores, axis=-1).astype(dt)
        out = jnp.einsum("bhqk,bhkd->bhqd", p.astype(f32), v.astype(f32))
        out = out.transpose(0, 2, 1, 3).reshape(b * s_x, nh * hd).astype(dt)
        out = jnp.dot(out, self.wo, preferred_element_type=f32).astype(dt)
        return out.reshape(b, s_x, self.embed_dim)


# ---------------------------------- main ------------------------------------

if __name__ == "__main__":
    # Small Gemma2-style config: GQA with 4 query heads / 2 kv heads,
    # head_dim = embed_dim // num_heads = 64, sliding window 64, softcap 50.
    B, S, D = 2, 256, 256
    NUM_HEADS, NUM_KV_HEADS, HEAD_DIM = 4, 2, 64

    key = jax.random.PRNGKey(0)
    k_params, k_x = jax.random.split(key)

    attn = Gemma2AttentionPallas(
        embed_dim=D,
        num_heads=NUM_HEADS,
        num_kv_heads=NUM_KV_HEADS,
        head_dim=HEAD_DIM,
        sliding_window_size=64,
        softcapping=50.0,
        query_pre_attn_scalar=None,
        key=k_params,
        dtype=jnp.bfloat16,
    )

    x = jax.random.normal(k_x, (B, S, D), dtype=jnp.float32).astype(jnp.bfloat16)

    out = jax.block_until_ready(attn(x))          # self-attention: y = x
    ref = jax.block_until_ready(attn.reference(x))

    assert out.shape == (B, S, D)
    out_f = out.astype(jnp.float32)
    ref_f = ref.astype(jnp.float32)
    max_diff = float(jnp.max(jnp.abs(out_f - ref_f)))
    assert jnp.allclose(out_f, ref_f, atol=2e-2, rtol=2e-2), (
        f"mismatch vs reference, max abs diff = {max_diff}"
    )

    print("KERNEL_OK")
</pallas_src>

<mosaic_0001>
module attributes {stable_mosaic.version = 11 : i64} {
  func.func @_matmul_kernel(%arg0: i32, %arg1: i32, %arg2: i32, %arg3: memref<256x256xbf16, #tpu.memory_space<vmem>>, %arg4: memref<256x256xbf16, #tpu.memory_space<vmem>>, %arg5: memref<256x256xbf16, #tpu.memory_space<vmem>>, %arg6: memref<256x256xf32, #tpu.memory_space<vmem>>) attributes {dimension_semantics = [#tpu.dimension_semantics<parallel>, #tpu.dimension_semantics<parallel>, #tpu.dimension_semantics<arbitrary>], iteration_bounds = array<i64: 2, 2, 1>, scalar_prefetch = 0 : i64, scratch_operands = 1 : i64, tpu.core_type = #tpu.core_type<tc>, window_params = [{transform_indices = @transform_0, window_bounds = array<i64: 256, 256>}, {transform_indices = @transform_1, window_bounds = array<i64: 256, 256>}, {transform_indices = @transform_2, window_bounds = array<i64: 256, 256>}]} {
    %c0_i32 = arith.constant 0 : i32
    %0 = arith.cmpi eq, %arg2, %c0_i32 : i32
    %1 = arith.extui %0 : i1 to i32
    %c0_i32_0 = arith.constant 0 : i32
    %2 = arith.cmpi ne, %1, %c0_i32_0 : i32
    scf.if %2 {
      %cst_10 = arith.constant 0.000000e+00 : f32
      %12 = vector.broadcast %cst_10 : f32 to vector<256x256xf32>
      %c0_11 = arith.constant 0 : index
      %c0_12 = arith.constant 0 : index
      %13 = vector.load %arg6[%c0_11, %c0_12] : memref<256x256xf32, #tpu.memory_space<vmem>>, vector<256x256xf32>
      tpu.vector_store %arg6[%c0_11, %c0_12], %12 {strides = array<i32>} : memref<256x256xf32, #tpu.memory_space<vmem>>, vector<256x256xf32>,
    } else {
    }
    %c0 = arith.constant 0 : index
    %c0_1 = arith.constant 0 : index
    %3 = vector.load %arg6[%c0, %c0_1] : memref<256x256xf32, #tpu.memory_space<vmem>>, vector<256x256xf32>
    %c0_2 = arith.constant 0 : index
    %c0_3 = arith.constant 0 : index
    %4 = vector.load %arg3[%c0_2, %c0_3] : memref<256x256xbf16, #tpu.memory_space<vmem>>, vector<256x256xbf16>
    %c0_4 = arith.constant 0 : index
    %c0_5 = arith.constant 0 : index
    %5 = vector.load %arg4[%c0_4, %c0_5] : memref<256x256xbf16, #tpu.memory_space<vmem>>, vector<256x256xbf16>
    %cst = arith.constant dense<0.000000e+00> : vector<256x256xf32>
    %6 = tpu.matmul %4, %5, %cst {dimension_numbers = #tpu.dot_dimension_numbers<[1], [0], [0], [1], [0, 0, 1, 1], [], []>} : vector<256x256xbf16>, vector<256x256xbf16>, vector<256x256xf32> -> vector<256x256xf32>
    %7 = arith.addf %3, %6 : vector<256x256xf32>
    %c0_6 = arith.constant 0 : index
    %c0_7 = arith.constant 0 : index
    %8 = vector.load %arg6[%c0_6, %c0_7] : memref<256x256xf32, #tpu.memory_space<vmem>>, vector<256x256xf32>
    tpu.vector_store %arg6[%c0_6, %c0_7], %7 {strides = array<i32>} : memref<256x256xf32, #tpu.memory_space<vmem>>, vector<256x256xf32>,
    %c0_i32_8 = arith.constant 0 : i32
    %9 = arith.cmpi eq, %arg2, %c0_i32_8 : i32
    %10 = arith.extui %9 : i1 to i32
    %c0_i32_9 = arith.constant 0 : i32
    %11 = arith.cmpi ne, %10, %c0_i32_9 : i32
    scf.if %11 {
      %c0_10 = arith.constant 0 : index
      %c0_11 = arith.constant 0 : index
      %12 = vector.load %arg6[%c0_10, %c0_11] : memref<256x256xf32, #tpu.memory_space<vmem>>, vector<256x256xf32>
      %13 = arith.truncf %12 : vector<256x256xf32> to vector<256x256xbf16>
      %c0_12 = arith.constant 0 : index
      %c0_13 = arith.constant 0 : index
      %14 = vector.load %arg5[%c0_12, %c0_13] : memref<256x256xbf16, #tpu.memory_space<vmem>>, vector<256x256xbf16>
      tpu.vector_store %arg5[%c0_12, %c0_13], %13 {strides = array<i32>} : memref<256x256xbf16, #tpu.memory_space<vmem>>, vector<256x256xbf16>,
    } else {
    }
    return
  }
  func.func @transform_0(%arg0: i32, %arg1: i32, %arg2: i32) -> (i32, i32) {
    %c0_i32 = arith.constant 0 : i32
    return %arg0, %arg2 : i32, i32
  }
  func.func @transform_1(%arg0: i32, %arg1: i32, %arg2: i32) -> (i32, i32) {
    %c0_i32 = arith.constant 0 : i32
    return %arg2, %arg1 : i32, i32
  }
  func.func @transform_2(%arg0: i32, %arg1: i32, %arg2: i32) -> (i32, i32) {
    %c0_i32 = arith.constant 0 : i32
    return %arg0, %arg1 : i32, i32
  }
}

</mosaic_0001>

<bundles_post_ra>
// kernel: tpu_custom_call.1
= control target key start
LH: loop header
LB: loop body
LE: loop exit
PB: predicated region body
PF: predicated region fallthrough
CT: control target
= control target key end

     0   :  { %s2610_s0 = inlined_call_operand.hbm [shape: bf16[512,256], index: 0, kind: input, shape index: {}]   ;;  %s2611_s1 = inlined_call_operand.hbm [shape: bf16[256,512], index: 1, kind: input, shape index: {}]   ;;  %s2612_s2 = inlined_call_operand.hbm [shape: bf16[512,512], index: 2, kind: output, shape index: {}]  }
   0x1   :  { %2626 = sst [smem:[#allocation18_spill]] %s2610_s0 }
   0x2   :  { %2627 = sst [smem:[#allocation19_spill]] %s2612_s2 }
   0x3   :  { %7 = vsyncpa [#allocation4], 0 }
   0x4   :  { %9 = vsyncpa [#allocation4 + $0x1], 0 }
   0x5   :  { %10 = vsyncpa [#allocation7], 0 }
   0x6   :  { %12 = vsyncpa [#allocation7 + $0x1], 0 }
   0x7   :  { %13 = vsyncpa [#allocation5], 0 }
   0x8   :  { %15 = vsyncpa [#allocation5 + $0x1], 0  ;;  %s2158_s9 = smov 0   ;;  %s2160_s10 = smov 0  }
   0x9   :  { %s2162_s11 = smov 0   ;;  %s2164_s12 = smov 0  }
   0xa   :  { %s2166_s13 = smov 0   ;;  %s2168_s14 = smov 0  }
   0xb   :  { %s2170_s15 = smov 0   ;;  %s2172_s16 = smov 0  }
   0xc   :  { %s2174_s17 = smov 0   ;;  %s2176_s18 = smov 0  }
   0xd   :  { %s2178_s19 = smov 0   ;;  %s2180_s20 = smov 0  }
   0xe   :  { %s2182_s21 = smov 0   ;;  %s2184_s22 = smov 0  }
   0xf LB: > { %2628 = sst [smem:[#allocation12_spill]] %s2120_s19  ;;  %s1503_s23 = sadd.s32 4294967295, %s2132_s22   ;;  %s2132_s22 = sphi %s2184_s22, %s21_s22   ;;  %s2128_s21 = sphi %s2182_s21, %s2662_s21   ;;  %s2124_s20 = sphi %s2180_s20, %s2673_s20   ;;  %s2120_s19 = sphi %s2178_s19, %s2660_s19   ;;  %s2116_s18 = sphi %s2176_s18, %s2672_s18   ;;  %s2112_s17 = sphi %s2174_s17, %s2671_s17   ;;  %s2108_s16 = sphi %s2172_s16, %s2670_s16   ;;  %s2104_s15 = sphi %s2170_s15, %s2669_s15   ;;  %s2100_s14 = sphi %s2168_s14, %s2668_s14   ;;  %s2096_s13 = sphi %s2166_s13, %s2667_s13   ;;  %s2092_s12 = sphi %s2164_s12, %s2666_s12   ;;  %s2088_s11 = sphi %s2162_s11, %s2665_s11   ;;  %s2084_s10 = sphi %s2160_s10, %s2664_s10   ;;  %s2080_s9 = sphi %s2158_s9, %s2663_s9  }
  0x10   : > { %2629 = sst [smem:[#allocation13_spill]] %s2128_s21  ;;  %s40_s24 = sadd.s32 1, %s2128_s21 }
  0x11   : > { %p56_p0 = scmp.ne.s32.totalorder %s2112_s17, %s2108_s16  ;;  %p2614_p1 = scmp.eq.s32.totalorder %s2132_s22, 0 }
  0x12   : > { %p62_p2 = scmp.ne.s32.totalorder %s2108_s16, %s2104_s15  ;;  %p2233_p3 = scmp.eq.s32.totalorder %s1503_s23, 0 }
  0x13   : > { %p2237_p4 = scmp.eq.s32.totalorder %s1503_s23, 3  ;;  %p58_p5 = por %p2614_p1, %p56_p0 }
  0x14   : > { %p2245_p6 = por %p2233_p3, %p62_p2  ;;  %p2613_p7 = scmp.lt.s32.totalorder %s2132_s22, 4 }
  0x15   : > { %s2631_s27 = scalar_select %p2237_p4, 1, 0 }
  0x16   : > { %s2632_s28 = scalar_select %p2245_p6, 1, 0 }
  0x17   : > { %s142_s29 = sand.u32 1, %s2112_s17   ;;  %s1622_s30 = sshll.u32 %s2128_s21, 12 }
  0x18   : > { %s1507_s3 = sshll.u32 %s142_s29, 8  ;;  %s2633_s0 = sld [smem:[#allocation18_spill]] }
  0x19   : > { %s146_s7 = scalar_lea.vmem [#allocation3], %s1507_s3  ;;  %p2259_p8 = pnand %p2613_p7, %p58_p5 }
  0x1a   : > { %s156_s8 = sshll.u32 %s146_s7, 4  ;;  %s2265_s23 = scalar_lea.sflag [#allocation4], %s142_s29  ;;  %s2263_s8 = int_to_ptr.vmem [resolvable:$true] %s156_s8 }
  0x1b   : > { %p1924_p10 = pneg %p2259_p8 }
  0x1e   : > { %s2255_s6 = scalar_lea.hbm %s2633_s0, %s1622_s30  ;;  %s1927_s5 = scalar_lea.hbm %s2633_s0, 8192 }
  0x1f   : > { %s1922_s4 = scalar_lea.hbm %s2255_s6, 4096  ;;  %p1928_p13 = scmp.lt.u32.totalorder %s2255_s6, %s2633_s0 }
  0x20   : > { %p1923_p9 = scmp.ne.s32.totalorder %s2255_s6, %s1922_s4  ;;  %p1929_p0 = scmp.lt.u32.totalorder %s1927_s5, %s1922_s4 }
  0x21   : > { %p1931_p5 = scmp.lt.u32.totalorder %s1922_s4, %s2255_s6 }
  0x22   : > { %p1925_p11 = pnand %p1924_p10, %p1923_p9  ;;  %p1930_p2 = por %p1929_p0, %p1928_p13 }
  0x24   : > { %p1926_p12 = pneg %p1925_p11  ;;  %p1932_p7 = por %p1931_p5, %p1930_p2 }
  0x26   : > { %p1933_p1 = pnand %p1932_p7, %p1926_p12 }
  0x28   : > { %1936 = shalt.err (!%p1933_p1)
}
  0x29   : > { %s1937_s29 = scalar_lea.vmem %s2263_s8, 4096  ;;  %s2134_s30 = smov [#allocation3]  }
  0x2a   : > { %p1938_p9 = scmp.ne.s32.totalorder %s2263_s8, %s1937_s29  ;;  %s1942_s3 = sshll.u32 %s2134_s30, 4  ;;  %s1943_s3 = int_to_ptr.vmem [resolvable:$false] %s1942_s3 }
  0x2b   : > { %s1944_s25 = scalar_lea.vmem %s1943_s3, 8192  ;;  %p1945_p4 = scmp.lt.s32.totalorder %s2263_s8, %s1943_s3 }
  0x2c   : > { %p1940_p11 = pnand %p1938_p9, %p1924_p10  ;;  %p1946_p13 = scmp.lt.s32.totalorder %s1944_s25, %s1937_s29 }
  0x2e   : > { %p1941_p6 = pneg %p1940_p11  ;;  %p1947_p0 = por %p1946_p13, %p1945_p4 }
  0x30   : > { %p1948_p2 = pnand %p1947_p0, %p1941_p6 }
  0x32   : > { %1951 = shalt.err (!%p1948_p2)
}
  0x33   : > { %s2616_s4 = smov 128   ;;  %s2617_s5 = smov 8  }
  0x34   : > { %1698 = dma.hbm_to_vmem [thread:$0]  (!%p2259_p8), %s2255_s6, 4096, %s2263_s8, %s2265_s23, %s2616_s4, %s2616_s4, %s2617_s5  }
  0x35   : > { %p1514_p1 = scmp.ge.s32.totalorder %s2132_s22, 1  ;;  %p188_p4 = scmp.lt.s32.totalorder %s2132_s22, 5 }
  0x36   : > { %s1504_s29 = sadd.s32 4294967294, %s2132_s22   ;;  %s36_s30 = sadd.s32 1, %s2124_s20 }
  0x37   : > { %p2298_p6 = pnand %p1514_p1, %p188_p4  ;;  %s77_s3 = sadd.s32 1, %s2100_s14 }
  0x38   : > { %p38_p7 = scmp.ge.s32.totalorder %s36_s30, 2  ;;  %p84_p10 = scmp.ne.s32.totalorder %s2100_s14, %s2096_s13 }
  0x39   : > { %p90_p12 = scmp.ne.s32.totalorder %s2096_s13, %s2092_s12  ;;  %s105_s15 = sadd.s32 1, %s2088_s11 }
  0x3a   : > { %s2675_s30 = smov (%p38_p7, %s36_s30), 0  ;;  %s2677_s24 = smov (!%p38_p7, %s40_s24), %s2128_s21 }
  0x3b   : > { %2636 = sst [smem:[#allocation14_spill]] %s2675_s30  ;;  %s73_s6 = ssub.s32 %s2124_s20, %s2675_s30 }
  0x3c   : > { %p2637_p8 = scmp.eq.s32.totalorder %s2132_s22, 0  ;;  %p42_p9 = scmp.ge.s32.totalorder %s2677_s24, 2 }
  0x3d   : > { %p75_p11 = scmp.eq.s32.totalorder %s73_s6, 0  ;;  %p2325_p13 = por %p90_p12, %p2233_p3 }
  0x3e   : > { %p2319_p5 = por %p84_p10, %p2637_p8  ;;  %p115_p0 = scmp.ne.s32.totalorder %s2088_s11, %s2084_s10 }
  0x3f   : > { %s2639_s12 = scalar_select %p2325_p13, 1, 0 }
  0x40   : > { %s2679_s24 = smov (%p42_p9, %s2677_s24), 0  ;;  %p2642_p2 = scmp.ne.s32.totalorder %s2631_s27, 0 }
  0x41   : > { %2640 = sst [smem:[#allocation15_spill]] %s2679_s24  ;;  %s44_s25 = ssub.s32 %s2128_s21, %s2679_s24 }
  0x42   : > { %s2334_s23 = scalar_select %p75_p11, %s2100_s14, %s77_s3  }
  0x43   : > { %p2340_p1 = por %p2642_p2, %p115_p0  ;;  %p47_p4 = scmp.eq.s32.totalorder %s44_s25, 0 }
  0x44   : > { %2641 = sst [smem:[#allocation16_spill]] %s2334_s23  ;;  %s102_s26 = sor.u32 %s73_s6, %s44_s25 }
  0x45   : > { %s2643_s4 = scalar_select %p2340_p1, 1, 0 }
  0x46   : > { %p103_p3 = scmp.eq.s32.totalorder %s102_s26, 0  ;;  %p121_p7 = scmp.ne.s32.totalorder %s2084_s10, %s2080_s9 }
  0x47   : > { %2644 = sst [smem:[#allocation17_spill]] %s2643_s4  ;;  %s2645_s5 = sadd.s32 1, %s2112_s17 }
  0x48   : > { %s2349_s0 = scalar_select %p47_p4, %s2112_s17, %s2645_s5  }
  0x49   : > { %s2352_s30 = scalar_select %p103_p3, %s2088_s11, %s105_s15  }
  0x4a   : > { %p122_p10 = scmp.eq.s32.totalorder %s1504_s29, 3  ;;  %s166_s3 = sand.u32 1, %s2100_s14  }
  0x4b   : > { %s1511_s23 = sshll.u32 %s166_s3, 8  ;;  %s1623_s24 = sshll.u32 %s2124_s20, 7 }
  0x4c   : > { %p2355_p12 = por %p122_p10, %p121_p7  ;;  %s170_s21 = scalar_lea.vmem [#allocation6], %s1511_s23 }
  0x4d   : > { %s180_s2 = sshll.u32 %s170_s21, 4  ;;  %s2363_s6 = scalar_lea.hbm %s2611_s1, %s1623_s24  ;;  %s2365_s2 = int_to_ptr.vmem [resolvable:$true] %s180_s2 }
  0x4e   : > { %s2646_s27 = scalar_select %p2355_p12, 1, 0 }
  0x4f   : > { %p2647_p8 = scmp.lt.s32.totalorder %s2132_s22, 4  ;;  %s2375_s21 = scalar_lea.sflag [#allocation7], %s166_s3 }
  0x50   : > { %s1952_s29 = scalar_lea.hbm %s2363_s6, 4096  ;;  %s1957_s4 = scalar_lea.hbm %s2611_s1, 8192 }
  0x51   : > { %p2371_p9 = pnand %p2647_p8, %p2319_p5  ;;  %p1953_p11 = scmp.ne.s32.totalorder %s2363_s6, %s1952_s29 }
  0x52   : > { %p1958_p5 = scmp.lt.u32.totalorder %s2363_s6, %s2611_s1  ;;  %p1959_p3 = scmp.lt.u32.totalorder %s1957_s4, %s1952_s29 }
  0x53   : > { %p1954_p0 = pneg %p2371_p9  ;;  %p1961_p10 = scmp.lt.u32.totalorder %s1952_s29, %s2363_s6 }
  0x54   : > { %p1960_p7 = por %p1959_p3, %p1958_p5 }
  0x55   : > { %p1955_p2 = pnand %p1954_p0, %p1953_p11 }
  0x56   : > { %p1962_p8 = por %p1961_p10, %p1960_p7 }
  0x57   : > { %p1956_p4 = pneg %p1955_p2 }
  0x59   : > { %p1963_p12 = pnand %p1962_p8, %p1956_p4 }
  0x5b   : > { %1966 = shalt.err (!%p1963_p12)
}
  0x5c   : > { %s1967_s23 = scalar_lea.vmem %s2365_s2, 4096  ;;  %s2137_s25 = smov [#allocation6]  }
  0x5d   : > { %p1968_p11 = scmp.ne.s32.totalorder %s2365_s2, %s1967_s23  ;;  %s1972_s26 = sshll.u32 %s2137_s25, 4  ;;  %s1973_s26 = int_to_ptr.vmem [resolvable:$false] %s1972_s26 }
  0x5e   : > { %s1974_s3 = scalar_lea.vmem %s1973_s26, 8192  ;;  %p1975_p13 = scmp.lt.s32.totalorder %s2365_s2, %s1973_s26 }
  0x5f   : > { %p1970_p2 = pnand %p1968_p11, %p1954_p0  ;;  %p1976_p5 = scmp.lt.s32.totalorder %s1974_s3, %s1967_s23 }
  0x61   : > { %p1971_p1 = pneg %p1970_p2  ;;  %p1977_p3 = por %p1976_p5, %p1975_p13 }
  0x63   : > { %p1978_p7 = pnand %p1977_p3, %p1971_p1 }
  0x65   : > { %1981 = shalt.err (!%p1978_p7)
}
  0x66   : > { %s2138_s29 = smov 256   ;;  %s2649_s19 = smov 8  }
  0x67   : > { %s2650_s24 = smov 128   ;;  %192 = sbr.rel (%p2298_p6) target bundleno = 469 (0x1d5), region = 28 }
  0x68   : > { %1701 = dma.hbm_to_vmem [thread:$0]  (!%p2371_p9), %s2363_s6, 4096, %s2365_s2, %s2375_s21, %s2138_s29, %s2650_s24, %s2649_s19  }
  0x69   : > { %s194_s4 = sand.u32 (!%p2298_p6), 1, %s2108_s16   ;;  %p2651_p13 = scmp.ne.s32.totalorder (!%p2298_p6), %s2632_s28, 0 }
  0x6a   : > { %s1515_s15 = sshll.u32 (!%p2298_p6), %s194_s4, 8  ;;  %s195_s8 = scalar_lea.sflag (!%p2298_p6), [#allocation4], %s194_s4 }
  0x6b   : > { %s2408_s23 = scalar_lea.vmem (!%p2298_p6), [#allocation3], %s1515_s15 }
  0x6e   : > { %2067 = dma.done.wait (%p2651_p13), %s195_s8, 4096  }
  0x6f   : > { %2069 = vsyncadd (%p2651_p13), %s195_s8, 4294963200  ;;  %s203_s5 = sand.u32 1, %s2096_s13   ;;  %p2652_p6 = scmp.ne.s32.totalorder %s2639_s12, 0 }
  0x70   : > { %s1516_s25 = sshll.u32 %s203_s5, 8  ;;  %s204_s2 = scalar_lea.sflag [#allocation7], %s203_s5 }
  0x71   : > { %s2415_s6 = scalar_lea.vmem [#allocation6], %s1516_s25 }
  0x72   : > { %2071 = dma.done.wait (%p2652_p6), %s204_s2, 4096  }
  0x73   : > { %2073 = vsyncadd (%p2652_p6), %s204_s2, 4294963200  ;;  %v1826_v0 = vld [vmem:[%s2415_s6 + $0x4] ss:$8 sps:$4 sm:$0xff]   ;;  %v1828_v1 = vld [vmem:[%s2415_s6] ss:$8 sps:$4 sm:$0xff]   ;;  %s230_s28 = sand.u32 1, %s2084_s10  }
  0x74   : > { %755 = vmatprep.subr.bf16.mxu0 %v1826_v0  ;;  %1657 = vmatprep.subr.bf16.mxu1 %v1826_v0  ;;  %v1829_v2 = vld [vmem:[%s2415_s6 + $0x14] ss:$8 sps:$4 sm:$0xff]   ;;  %v1831_v3 = vld [vmem:[%s2415_s6 + $0x10] ss:$8 sps:$4 sm:$0xff]   ;;  %v1832_v4 = vld [vmem:[%s2415_s6 + $0x24] ss:$8 sps:$4 sm:$0xff]  }
  0x75   : > { %756 = vmatpush1.bf16.msra.mxu0 %v1828_v1  ;;  %1673 = vmatpush1.bf16.msra.mxu1 %v1828_v1  ;;  %v1834_v5 = vld [vmem:[%s2415_s6 + $0x20] ss:$8 sps:$4 sm:$0xff]   ;;  %v1835_v6 = vld [vmem:[%s2415_s6 + $0x34] ss:$8 sps:$4 sm:$0xff]   ;;  %v1837_v7 = vld [vmem:[%s2415_s6 + $0x30] ss:$8 sps:$4 sm:$0xff]  }
  0x76   : > { %757 = vmatprep.subr.bf16.mxu0 %v1829_v2  ;;  %1658 = vmatprep.subr.bf16.mxu1 %v1829_v2  ;;  %v1838_v8 = vld [vmem:[%s2415_s6 + $0x44] ss:$8 sps:$4 sm:$0xff]   ;;  %v1840_v9 = vld [vmem:[%s2415_s6 + $0x40] ss:$8 sps:$4 sm:$0xff]   ;;  %v1841_v10 = vld [vmem:[%s2415_s6 + $0x54] ss:$8 sps:$4 sm:$0xff]  }
  0x77   : > { %v1843_v11 = vld [vmem:[%s2415_s6 + $0x50] ss:$8 sps:$4 sm:$0xff]   ;;  %v1844_v12 = vld [vmem:[%s2415_s6 + $0x64] ss:$8 sps:$4 sm:$0xff]   ;;  %v1846_v14 = vld [vmem:[%s2415_s6 + $0x60] ss:$8 sps:$4 sm:$0xff]  }
  0x78   : > { %v1876_v13 = vld [vmem:[%s2408_s23 + $0x4] ss:$8 sps:$4 sm:$0xff]   ;;  %v1847_v16 = vld [vmem:[%s2415_s6 + $0x74] ss:$8 sps:$4 sm:$0xff]   ;;  %v1849_v17 = vld [vmem:[%s2415_s6 + $0x70] ss:$8 sps:$4 sm:$0xff]  }
  0x79   : > { %758 = vmatpush1.bf16.msra.mxu0 %v1831_v3  ;;  %1674 = vmatpush1.bf16.msra.mxu1 %v1831_v3  ;;  %v1879_v15 = vld [vmem:[%s2408_s23 + $0x84] ss:$8 sps:$4 sm:$0xff]   ;;  %v1852_v19 = vld [vmem:[%s2415_s6 + $0x80] ss:$8 sps:$4 sm:$0xff]   ;;  %v1853_v20 = vld [vmem:[%s2415_s6 + $0x94] ss:$8 sps:$4 sm:$0xff]  }
  0x7a   : > { %759 = vmatprep.subr.bf16.mxu0 %v1832_v4  ;;  %1659 = vmatprep.subr.bf16.mxu1 %v1832_v4  ;;  %v1850_v18 = vld [vmem:[%s2415_s6 + $0x84] ss:$8 sps:$4 sm:$0xff]   ;;  %v1855_v21 = vld [vmem:[%s2415_s6 + $0x90] ss:$8 sps:$4 sm:$0xff]   ;;  %v1858_v23 = vld [vmem:[%s2415_s6 + $0xa0] ss:$8 sps:$4 sm:$0xff]  }
  0x7b   : > { %787 = vmatprep.mubr.bf16.mxu0 %v1876_v13  ;;  %867 = vmatprep.mubr.bf16.mxu1 %v1879_v15  ;;  %v1856_v22 = vld [vmem:[%s2415_s6 + $0xa4] ss:$8 sps:$4 sm:$0xff]   ;;  %v1859_v24 = vld [vmem:[%s2415_s6 + $0xb4] ss:$8 sps:$4 sm:$0xff]   ;;  %v1861_v25 = vld [vmem:[%s2415_s6 + $0xb0] ss:$8 sps:$4 sm:$0xff]  }
  0x7c   : > { %v1862_v26 = vld [vmem:[%s2415_s6 + $0xc4] ss:$8 sps:$4 sm:$0xff]   ;;  %v1864_v27 = vld [vmem:[%s2415_s6 + $0xc0] ss:$8 sps:$4 sm:$0xff]   ;;  %v1865_v28 = vld [vmem:[%s2415_s6 + $0xd4] ss:$8 sps:$4 sm:$0xff]  }
  0x7d   : > { %760 = vmatpush1.bf16.msra.mxu0 %v1834_v5  ;;  %1675 = vmatpush1.bf16.msra.mxu1 %v1834_v5  ;;  %v1867_v29 = vld [vmem:[%s2415_s6 + $0xd0] ss:$8 sps:$4 sm:$0xff]   ;;  %v1868_v30 = vld [vmem:[%s2415_s6 + $0xe4] ss:$8 sps:$4 sm:$0xff]   ;;  %v1870_v31 = vld [vmem:[%s2415_s6 + $0xe0] ss:$8 sps:$4 sm:$0xff]  }
  0x7e   : > { %761 = vmatprep.subr.bf16.mxu0 %v1835_v6  ;;  %1660 = vmatprep.subr.bf16.mxu1 %v1835_v6  ;;  %v1871_v32 = vld [vmem:[%s2415_s6 + $0xf4] ss:$8 sps:$4 sm:$0xff]   ;;  %v1873_v33 = vld [vmem:[%s2415_s6 + $0xf0] ss:$8 sps:$4 sm:$0xff]   ;;  %v1874_v34 = vld [vmem:[%s2408_s23] ss:$8 sps:$4 sm:$0xff]  }
  0x7f   : > { %v1877_v35 = vld [vmem:[%s2408_s23 + $0x80] ss:$8 sps:$4 sm:$0xff]   ;;  %v1880_v36 = vld [vmem:[%s2408_s23 + $0x14] ss:$8 sps:$4 sm:$0xff]   ;;  %v1884_v38 = vld [vmem:[%s2408_s23 + $0x10] ss:$8 sps:$4 sm:$0xff]  }
  0x80   : > { %v1882_v37 = vld [vmem:[%s2408_s23 + $0x94] ss:$8 sps:$4 sm:$0xff]   ;;  %v1885_v39 = vld [vmem:[%s2408_s23 + $0x90] ss:$8 sps:$4 sm:$0xff]   ;;  %v1886_v40 = vld [vmem:[%s2408_s23 + $0x24] ss:$8 sps:$4 sm:$0xff]  }
  0x81   : > { %762 = vmatpush1.bf16.msra.mxu0 %v1837_v7  ;;  %1676 = vmatpush1.bf16.msra.mxu1 %v1837_v7  ;;  %v1888_v41 = vld [vmem:[%s2408_s23 + $0xa4] ss:$8 sps:$4 sm:$0xff]   ;;  %v1890_v42 = vld [vmem:[%s2408_s23 + $0x20] ss:$8 sps:$4 sm:$0xff]   ;;  %v1892_v44 = vld [vmem:[%s2408_s23 + $0x34] ss:$8 sps:$4 sm:$0xff]  }
  0x82   : > { %763 = vmatprep.subr.bf16.mxu0 %v1838_v8  ;;  %1661 = vmatprep.subr.bf16.mxu1 %v1838_v8  ;;  %v1891_v43 = vld [vmem:[%s2408_s23 + $0xa0] ss:$8 sps:$4 sm:$0xff]   ;;  %v1894_v45 = vld [vmem:[%s2408_s23 + $0xb4] ss:$8 sps:$4 sm:$0xff]   ;;  %v1896_v46 = vld [vmem:[%s2408_s23 + $0x30] ss:$8 sps:$4 sm:$0xff]  }
  0x83   : > { %v1897_v47 = vld [vmem:[%s2408_s23 + $0xb0] ss:$8 sps:$4 sm:$0xff]   ;;  %v1898_v48 = vld [vmem:[%s2408_s23 + $0x44] ss:$8 sps:$4 sm:$0xff]   ;;  %v1902_v50 = vld [vmem:[%s2408_s23 + $0x40] ss:$8 sps:$4 sm:$0xff]  }
  0x84   : > { %v1900_v49 = vld [vmem:[%s2408_s23 + $0xc4] ss:$8 sps:$4 sm:$0xff]   ;;  %v1903_v51 = vld [vmem:[%s2408_s23 + $0xc0] ss:$8 sps:$4 sm:$0xff]   ;;  %v1904_v52 = vld [vmem:[%s2408_s23 + $0x54] ss:$8 sps:$4 sm:$0xff]  }
  0x85   : > { %764 = vmatpush1.bf16.msra.mxu0 %v1840_v9  ;;  %1677 = vmatpush1.bf16.msra.mxu1 %v1840_v9  ;;  %v1906_v53 = vld [vmem:[%s2408_s23 + $0xd4] ss:$8 sps:$4 sm:$0xff]   ;;  %v1908_v54 = vld [vmem:[%s2408_s23 + $0x50] ss:$8 sps:$4 sm:$0xff]   ;;  %v1910_v56 = vld [vmem:[%s2408_s23 + $0x64] ss:$8 sps:$4 sm:$0xff]  }
  0x86   : > { %765 = vmatprep.subr.bf16.mxu0 %v1841_v10  ;;  %1662 = vmatprep.subr.bf16.mxu1 %v1841_v10  ;;  %v1909_v55 = vld [vmem:[%s2408_s23 + $0xd0] ss:$8 sps:$4 sm:$0xff]   ;;  %v1912_v57 = vld [vmem:[%s2408_s23 + $0xe4] ss:$8 sps:$4 sm:$0xff]   ;;  %v1914_v58 = vld [vmem:[%s2408_s23 + $0x60] ss:$8 sps:$4 sm:$0xff]  }
  0x87   : > { %v1915_v59 = vld [vmem:[%s2408_s23 + $0xe0] ss:$8 sps:$4 sm:$0xff]   ;;  %v1916_v60 = vld [vmem:[%s2408_s23 + $0x74] ss:$8 sps:$4 sm:$0xff]   ;;  %v1920_v62 = vld [vmem:[%s2408_s23 + $0x70] ss:$8 sps:$4 sm:$0xff]  }
  0x88   : > { %v1918_v61 = vld [vmem:[%s2408_s23 + $0xf4] ss:$8 sps:$4 sm:$0xff]   ;;  %v1921_v63 = vld [vmem:[%s2408_s23 + $0xf0] ss:$8 sps:$4 sm:$0xff]   ;;  %s1517_s7 = sshll.u32 %s230_s28, 8  ;;  %s2653_s21 = sld [smem:[#allocation12_spill]] }
  0x89   : > { %766 = vmatpush1.bf16.msra.mxu0 %v1843_v11  ;;  %1678 = vmatpush1.bf16.msra.mxu1 %v1843_v11  ;;  %s2488_s12 = scalar_lea.vmem [#allocation8], %s1517_s7  ;;  %s1616_s26 = sshll.u32 %s2116_s18, 1 }
  0x8a   : > { %767 = vmatprep.subr.bf16.mxu0 %v1844_v12  ;;  %1663 = vmatprep.subr.bf16.mxu1 %v1844_v12  ;;  %s1384_s18 = sshll.u32 %s2488_s12, 4  ;;  %s2654_s24 = sld [smem:[#allocation17_spill]]  ;;  %s2526_s18 = int_to_ptr.vmem [resolvable:$true] %s1384_s18 }
  0x8b   : > { %s2655_s8 = sld [smem:[#allocation19_spill]]  ;;  %s2534_s5 = scalar_lea.sflag [#allocation5], %s230_s28 }
  0x8c   : > { %s1982_s25 = scalar_lea.vmem %s2526_s18, 4096  ;;  %s2139_s2 = smov [#allocation8]  }
  0x8d   : > { %768 = vmatpush1.bf16.msra.mxu0 %v1846_v14  ;;  %1679 = vmatpush1.bf16.msra.mxu1 %v1846_v14  ;;  %p1983_p1 = scmp.ne.s32.totalorder %s2526_s18, %s1982_s25  ;;  %s1986_s6 = sshll.u32 %s2139_s2, 4  ;;  %s1987_s6 = int_to_ptr.vmem [resolvable:$false] %s1986_s6 }
  0x8e   : > { %769 = vmatprep.subr.bf16.mxu0 %v1847_v16  ;;  %1664 = vmatprep.subr.bf16.mxu1 %v1847_v16  ;;  %s1656_s3 = sshll.u32 %s2653_s21, 7  ;;  %s1988_s7 = scalar_lea.vmem %s1987_s6, 8192 }
  0x8f   : > { %s1381_s29 = sadd.s32 %s1656_s3, %s1616_s26  ;;  %p1989_p4 = scmp.lt.s32.totalorder %s2526_s18, %s1987_s6 }
  0x90   : > { %s1618_s19 = sshll.u32 %s1381_s29, 6  ;;  %p2656_p12 = scmp.ne.s32.totalorder %s2654_s24, 0 }
  0x91   : > { %770 = vmatpush1.bf16.msra.mxu0 %v1849_v17  ;;  %1680 = vmatpush1.bf16.msra.mxu1 %v1849_v17  ;;  %s2524_s23 = scalar_lea.hbm %s2655_s8, %s1618_s19  ;;  %p1990_p10 = scmp.lt.s32.totalorder %s1988_s7, %s1982_s25 }
  0x92   : > { %771 = vmatprep.subr.bf16.mxu0 %v1850_v18  ;;  %1665 = vmatprep.subr.bf16.mxu1 %v1850_v18  ;;  %p1984_p9 = pnand %p1983_p1, %p2656_p12 }
  0x93   : > { %p1991_p8 = por %p1990_p10, %p1989_p4 }
  0x94   : > { %p1985_p0 = pneg %p1984_p9 }
  0x95   : > { %772 = vmatpush1.bf16.msra.mxu0 %v1852_v19  ;;  %1681 = vmatpush1.bf16.msra.mxu1 %v1852_v19 }
  0x96   : > { %773 = vmatprep.subr.bf16.mxu0 %v1853_v20  ;;  %1666 = vmatprep.subr.bf16.mxu1 %v1853_v20  ;;  %p1992_p11 = pnand %p1991_p8, %p1985_p0 }
  0x99   : > { %774 = vmatpush1.bf16.msra.mxu0 %v1855_v21  ;;  %1682 = vmatpush1.bf16.msra.mxu1 %v1855_v21 }
  0x9a   : > { %775 = vmatprep.subr.bf16.mxu0 %v1856_v22  ;;  %1667 = vmatprep.subr.bf16.mxu1 %v1856_v22 }
  0x9d   : > { %776 = vmatpush1.bf16.msra.mxu0 %v1858_v23  ;;  %1683 = vmatpush1.bf16.msra.mxu1 %v1858_v23 }
  0x9e   : > { %777 = vmatprep.subr.bf16.mxu0 %v1859_v24  ;;  %1668 = vmatprep.subr.bf16.mxu1 %v1859_v24 }
  0xa1   : > { %778 = vmatpush1.bf16.msra.mxu0 %v1861_v25  ;;  %1684 = vmatpush1.bf16.msra.mxu1 %v1861_v25 }
  0xa2   : > { %779 = vmatprep.subr.bf16.mxu0 %v1862_v26  ;;  %1669 = vmatprep.subr.bf16.mxu1 %v1862_v26 }
  0xa5   : > { %780 = vmatpush1.bf16.msra.mxu0 %v1864_v27  ;;  %1685 = vmatpush1.bf16.msra.mxu1 %v1864_v27 }
  0xa6   : > { %781 = vmatprep.subr.bf16.mxu0 %v1865_v28  ;;  %1670 = vmatprep.subr.bf16.mxu1 %v1865_v28 }
  0xa9   : > { %782 = vmatpush1.bf16.msra.mxu0 %v1867_v29  ;;  %1686 = vmatpush1.bf16.msra.mxu1 %v1867_v29 }
  0xaa   : > { %783 = vmatprep.subr.bf16.mxu0 %v1868_v30  ;;  %1671 = vmatprep.subr.bf16.mxu1 %v1868_v30 }
  0xad   : > { %784 = vmatpush1.bf16.msra.mxu0 %v1870_v31  ;;  %1687 = vmatpush1.bf16.msra.mxu1 %v1870_v31 }
  0xae   : > { %785 = vmatprep.subr.bf16.mxu0 %v1871_v32  ;;  %1672 = vmatprep.subr.bf16.mxu1 %v1871_v32 }
  0xb1   : > { %786 = vmatpush1.bf16.msra.mxu0 %v1873_v33  ;;  %1688 = vmatpush1.bf16.msra.mxu1 %v1873_v33 }
  0xb4   : > { %788 = vmatmul.mubr.bf16.vlgmr.msra.gmra.mrb[0].mxu0 %v1874_v34  ;;  %868 = vmatmul.mubr.bf16.vlgmr.msra.gmra.mrb[0].mxu1 %v1877_v35 }
  0xb5   : > { %797 = vmatprep.mubr.bf16.mxu0 %v1880_v36  ;;  %877 = vmatprep.mubr.bf16.mxu1 %v1882_v37 }
  0xbc   : > { %798 = vmatmul.mubr.bf16.gmra.mrb[4].mxu0 %v1884_v38  ;;  %878 = vmatmul.mubr.bf16.gmra.mrb[4].mxu1 %v1885_v39 }
  0xbd   : > { %807 = vmatprep.mubr.bf16.mxu0 %v1886_v40  ;;  %887 = vmatprep.mubr.bf16.mxu1 %v1888_v41 }
  0xc4   : > { %808 = vmatmul.mubr.bf16.gmra.mrb[8].mxu0 %v1890_v42  ;;  %888 = vmatmul.mubr.bf16.gmra.mrb[8].mxu1 %v1891_v43 }
  0xc5   : > { %817 = vmatprep.mubr.bf16.mxu0 %v1892_v44  ;;  %897 = vmatprep.mubr.bf16.mxu1 %v1894_v45 }
  0xcc   : > { %818 = vmatmul.mubr.bf16.gmra.mrb[12].mxu0 %v1896_v46  ;;  %898 = vmatmul.mubr.bf16.gmra.mrb[12].mxu1 %v1897_v47 }
  0xcd   : > { %827 = vmatprep.mubr.bf16.mxu0 %v1898_v48  ;;  %907 = vmatprep.mubr.bf16.mxu1 %v1900_v49 }
  0xd4   : > { %828 = vmatmul.mubr.bf16.gmra.mrb[16].mxu0 %v1902_v50  ;;  %908 = vmatmul.mubr.bf16.gmra.mrb[16].mxu1 %v1903_v51 }
  0xd5   : > { %837 = vmatprep.mubr.bf16.mxu0 %v1904_v52  ;;  %917 = vmatprep.mubr.bf16.mxu1 %v1906_v53 }
  0xdc   : > { %838 = vmatmul.mubr.bf16.gmra.mrb[20].mxu0 %v1908_v54  ;;  %918 = vmatmul.mubr.bf16.gmra.mrb[20].mxu1 %v1909_v55 }
  0xdd   : > { %847 = vmatprep.mubr.bf16.mxu0 %v1910_v56  ;;  %927 = vmatprep.mubr.bf16.mxu1 %v1912_v57 }
  0xe4   : > { %848 = vmatmul.mubr.bf16.gmra.mrb[24].mxu0 %v1914_v58  ;;  %928 = vmatmul.mubr.bf16.gmra.mrb[24].mxu1 %v1915_v59 }
  0xe5   : > { %857 = vmatprep.mubr.bf16.mxu0 %v1916_v60  ;;  %937 = vmatprep.mubr.bf16.mxu1 %v1918_v61 }
  0xec   : > { %858 = vmatmul.mubr.bf16.gmra.mrb[28].mxu0 %v1920_v62  ;;  %938 = vmatmul.mubr.bf16.gmra.mrb[28].mxu1 %v1921_v63 }
 0x187   : > { %v789_v0 = vpop.f32.mrb[0].mxu0  ;;  %v869_v1 = vpop.f32.mrb[0].mxu1 }
 0x188   : > { %v791_v2 = vpop.f32.mrb[1].mxu0  ;;  %v871_v3 = vpop.f32.mrb[1].mxu1 }
 0x189   : > { %v1624_v4 = vpack.c.bf16 %v791_v2, %v789_v0  ;;  %v1640_v5 = vpack.c.bf16 %v871_v3, %v869_v1  ;;  %v793_v6 = vpop.f32.mrb[2].mxu0  ;;  %v873_v7 = vpop.f32.mrb[2].mxu1 }
 0x18a   : > { %v795_v8 = vpop.f32.mrb[3].mxu0  ;;  %v875_v9 = vpop.f32.mrb[3].mxu1 }
 0x18b   : > { %1335 = vst [vmem:[%s2488_s12] sm:$0xff] %v1624_v4  ;;  %1351 = vst [vmem:[%s2488_s12 + $0x80] sm:$0xff] %v1640_v5  ;;  %v1625_v10 = vpack.c.bf16 %v795_v8, %v793_v6  ;;  %v1641_v11 = vpack.c.bf16 %v875_v9, %v873_v7 }
 0x18d   : > { %1336 = vst [vmem:[%s2488_s12 + $0x8] sm:$0xff] %v1625_v10  ;;  %1352 = vst [vmem:[%s2488_s12 + $0x88] sm:$0xff] %v1641_v11 }
 0x18f   : > { %v799_v12 = vpop.f32.mrb[4].mxu0  ;;  %v879_v13 = vpop.f32.mrb[4].mxu1 }
 0x190   : > { %v801_v14 = vpop.f32.mrb[5].mxu0  ;;  %v881_v15 = vpop.f32.mrb[5].mxu1 }
 0x191   : > { %v1626_v16 = vpack.c.bf16 %v801_v14, %v799_v12  ;;  %v1642_v17 = vpack.c.bf16 %v881_v15, %v879_v13  ;;  %v803_v18 = vpop.f32.mrb[6].mxu0  ;;  %v883_v19 = vpop.f32.mrb[6].mxu1 }
 0x192   : > { %v805_v20 = vpop.f32.mrb[7].mxu0  ;;  %v885_v21 = vpop.f32.mrb[7].mxu1 }
 0x193   : > { %1337 = vst [vmem:[%s2488_s12 + $0x10] sm:$0xff] %v1626_v16  ;;  %1353 = vst [vmem:[%s2488_s12 + $0x90] sm:$0xff] %v1642_v17  ;;  %v1627_v22 = vpack.c.bf16 %v805_v20, %v803_v18  ;;  %v1643_v23 = vpack.c.bf16 %v885_v21, %v883_v19 }
 0x195   : > { %1338 = vst [vmem:[%s2488_s12 + $0x18] sm:$0xff] %v1627_v22  ;;  %1354 = vst [vmem:[%s2488_s12 + $0x98] sm:$0xff] %v1643_v23 }
 0x197   : > { %v809_v24 = vpop.f32.mrb[8].mxu0  ;;  %v889_v25 = vpop.f32.mrb[8].mxu1 }
 0x198   : > { %v811_v26 = vpop.f32.mrb[9].mxu0  ;;  %v891_v27 = vpop.f32.mrb[9].mxu1 }
 0x199   : > { %v1628_v28 = vpack.c.bf16 %v811_v26, %v809_v24  ;;  %v1644_v29 = vpack.c.bf16 %v891_v27, %v889_v25  ;;  %v813_v30 = vpop.f32.mrb[10].mxu0  ;;  %v893_v31 = vpop.f32.mrb[10].mxu1 }
 0x19a   : > { %v815_v32 = vpop.f32.mrb[11].mxu0  ;;  %v895_v33 = vpop.f32.mrb[11].mxu1 }
 0x19b   : > { %1339 = vst [vmem:[%s2488_s12 + $0x20] sm:$0xff] %v1628_v28  ;;  %1355 = vst [vmem:[%s2488_s12 + $0xa0] sm:$0xff] %v1644_v29  ;;  %v1629_v34 = vpack.c.bf16 %v815_v32, %v813_v30  ;;  %v1645_v35 = vpack.c.bf16 %v895_v33, %v893_v31 }
 0x19d   : > { %1340 = vst [vmem:[%s2488_s12 + $0x28] sm:$0xff] %v1629_v34  ;;  %1356 = vst [vmem:[%s2488_s12 + $0xa8] sm:$0xff] %v1645_v35 }
 0x19f   : > { %v819_v36 = vpop.f32.mrb[12].mxu0  ;;  %v899_v37 = vpop.f32.mrb[12].mxu1 }
 0x1a0   : > { %v821_v38 = vpop.f32.mrb[13].mxu0  ;;  %v901_v39 = vpop.f32.mrb[13].mxu1 }
 0x1a1   : > { %v1630_v40 = vpack.c.bf16 %v821_v38, %v819_v36  ;;  %v1646_v41 = vpack.c.bf16 %v901_v39, %v899_v37  ;;  %v823_v42 = vpop.f32.mrb[14].mxu0  ;;  %v903_v43 = vpop.f32.mrb[14].mxu1 }
 0x1a2   : > { %v825_v44 = vpop.f32.mrb[15].mxu0  ;;  %v905_v45 = vpop.f32.mrb[15].mxu1 }
 0x1a3   : > { %1341 = vst [vmem:[%s2488_s12 + $0x30] sm:$0xff] %v1630_v40  ;;  %1357 = vst [vmem:[%s2488_s12 + $0xb0] sm:$0xff] %v1646_v41  ;;  %v1631_v46 = vpack.c.bf16 %v825_v44, %v823_v42  ;;  %v1647_v47 = vpack.c.bf16 %v905_v45, %v903_v43 }
 0x1a5   : > { %1342 = vst [vmem:[%s2488_s12 + $0x38] sm:$0xff] %v1631_v46  ;;  %1358 = vst [vmem:[%s2488_s12 + $0xb8] sm:$0xff] %v1647_v47 }
 0x1a7   : > { %v829_v48 = vpop.f32.mrb[16].mxu0  ;;  %v909_v49 = vpop.f32.mrb[16].mxu1 }
 0x1a8   : > { %v831_v50 = vpop.f32.mrb[17].mxu0  ;;  %v911_v51 = vpop.f32.mrb[17].mxu1 }
 0x1a9   : > { %v1632_v52 = vpack.c.bf16 %v831_v50, %v829_v48  ;;  %v1648_v53 = vpack.c.bf16 %v911_v51, %v909_v49  ;;  %v833_v54 = vpop.f32.mrb[18].mxu0  ;;  %v913_v55 = vpop.f32.mrb[18].mxu1 }
 0x1aa   : > { %v835_v56 = vpop.f32.mrb[19].mxu0  ;;  %v915_v57 = vpop.f32.mrb[19].mxu1 }
 0x1ab   : > { %1343 = vst [vmem:[%s2488_s12 + $0x40] sm:$0xff] %v1632_v52  ;;  %1359 = vst [vmem:[%s2488_s12 + $0xc0] sm:$0xff] %v1648_v53  ;;  %v1633_v58 = vpack.c.bf16 %v835_v56, %v833_v54  ;;  %v1649_v59 = vpack.c.bf16 %v915_v57, %v913_v55 }
 0x1ad   : > { %1344 = vst [vmem:[%s2488_s12 + $0x48] sm:$0xff] %v1633_v58  ;;  %1360 = vst [vmem:[%s2488_s12 + $0xc8] sm:$0xff] %v1649_v59 }
 0x1af   : > { %v839_v60 = vpop.f32.mrb[20].mxu0  ;;  %v919_v61 = vpop.f32.mrb[20].mxu1 }
 0x1b0   : > { %v841_v62 = vpop.f32.mrb[21].mxu0  ;;  %v921_v63 = vpop.f32.mrb[21].mxu1 }
 0x1b1   : > { %v1634_v0 = vpack.c.bf16 %v841_v62, %v839_v60  ;;  %v1650_v1 = vpack.c.bf16 %v921_v63, %v919_v61  ;;  %v843_v2 = vpop.f32.mrb[22].mxu0  ;;  %v923_v3 = vpop.f32.mrb[22].mxu1 }
 0x1b2   : > { %v845_v4 = vpop.f32.mrb[23].mxu0  ;;  %v925_v5 = vpop.f32.mrb[23].mxu1 }
 0x1b3   : > { %1345 = vst [vmem:[%s2488_s12 + $0x50] sm:$0xff] %v1634_v0  ;;  %1361 = vst [vmem:[%s2488_s12 + $0xd0] sm:$0xff] %v1650_v1  ;;  %v1635_v6 = vpack.c.bf16 %v845_v4, %v843_v2  ;;  %v1651_v7 = vpack.c.bf16 %v925_v5, %v923_v3 }
 0x1b5   : > { %1346 = vst [vmem:[%s2488_s12 + $0x58] sm:$0xff] %v1635_v6  ;;  %1362 = vst [vmem:[%s2488_s12 + $0xd8] sm:$0xff] %v1651_v7 }
 0x1b7   : > { %v849_v8 = vpop.f32.mrb[24].mxu0  ;;  %v929_v9 = vpop.f32.mrb[24].mxu1 }
 0x1b8   : > { %v851_v10 = vpop.f32.mrb[25].mxu0  ;;  %v931_v11 = vpop.f32.mrb[25].mxu1 }
 0x1b9   : > { %v1636_v12 = vpack.c.bf16 %v851_v10, %v849_v8  ;;  %v1652_v13 = vpack.c.bf16 %v931_v11, %v929_v9  ;;  %v853_v14 = vpop.f32.mrb[26].mxu0  ;;  %v933_v15 = vpop.f32.mrb[26].mxu1 }
 0x1ba   : > { %v855_v16 = vpop.f32.mrb[27].mxu0  ;;  %v935_v17 = vpop.f32.mrb[27].mxu1 }
 0x1bb   : > { %1347 = vst [vmem:[%s2488_s12 + $0x60] sm:$0xff] %v1636_v12  ;;  %1363 = vst [vmem:[%s2488_s12 + $0xe0] sm:$0xff] %v1652_v13  ;;  %v1637_v18 = vpack.c.bf16 %v855_v16, %v853_v14  ;;  %v1653_v19 = vpack.c.bf16 %v935_v17, %v933_v15 }
 0x1bd   : > { %1348 = vst [vmem:[%s2488_s12 + $0x68] sm:$0xff] %v1637_v18  ;;  %1364 = vst [vmem:[%s2488_s12 + $0xe8] sm:$0xff] %v1653_v19 }
 0x1bf   : > { %v859_v20 = vpop.f32.mrb[28].mxu0  ;;  %v939_v21 = vpop.f32.mrb[28].mxu1 }
 0x1c0   : > { %v861_v22 = vpop.f32.mrb[29].mxu0  ;;  %v941_v23 = vpop.f32.mrb[29].mxu1 }
 0x1c1   : > { %v1638_v24 = vpack.c.bf16 %v861_v22, %v859_v20  ;;  %v1654_v25 = vpack.c.bf16 %v941_v23, %v939_v21  ;;  %v863_v26 = vpop.f32.mrb[30].mxu0  ;;  %v943_v27 = vpop.f32.mrb[30].mxu1 }
 0x1c2   : > { %v865_v28 = vpop.f32.mrb[31].mxu0  ;;  %v945_v29 = vpop.f32.mrb[31].mxu1 }
 0x1c3   : > { %1349 = vst [vmem:[%s2488_s12 + $0x70] sm:$0xff] %v1638_v24  ;;  %1365 = vst [vmem:[%s2488_s12 + $0xf0] sm:$0xff] %v1654_v25  ;;  %v1639_v30 = vpack.c.bf16 %v865_v28, %v863_v26  ;;  %v1655_v31 = vpack.c.bf16 %v945_v29, %v943_v27 }
 0x1c5   : > { %1350 = vst [vmem:[%s2488_s12 + $0x78] sm:$0xff] %v1639_v30  ;;  %1366 = vst [vmem:[%s2488_s12 + $0xf8] sm:$0xff] %v1655_v31 }
 0x1c6   : > { %1995 = shalt.err (!%p1992_p11)
}
 0x1c7   : > { %s1996_s28 = scalar_lea.hbm %s2524_s23, 4096  ;;  %s2000_s26 = scalar_lea.hbm %s2655_s8, 16384 }
 0x1c8   : > { %p1997_p2 = scmp.ne.s32.totalorder %s2524_s23, %s1996_s28  ;;  %p2001_p7 = scmp.lt.u32.totalorder %s2524_s23, %s2655_s8 }
 0x1c9   : > { %p2002_p13 = scmp.lt.u32.totalorder %s2000_s26, %s1996_s28  ;;  %p2004_p1 = scmp.lt.u32.totalorder %s1996_s28, %s2524_s23 }
 0x1ca   : > { %p1998_p5 = pnand %p1997_p2, %p2656_p12 }
 0x1cb   : > { %p2003_p6 = por %p2002_p13, %p2001_p7 }
 0x1cc   : > { %p1999_p3 = pneg %p1998_p5 }
 0x1cd   : > { %p2005_p9 = por %p2004_p1, %p2003_p6 }
 0x1cf   : > { %p2006_p0 = pnand %p2005_p9, %p1999_p3 }
 0x1d1   : > { %2009 = shalt.err (!%p2006_p0)
}
 0x1d2   : > { %s2140_s19 = smov 128   ;;  %s2141_s4 = smov 256  }
 0x1d3   : > { %s2142_s15 = smov 8  }
 0x1d4   : > { %1693 = dma.vmem_to_hbm [thread:$0]  (%p2656_p12), %s2526_s18, 4096, %s2524_s23, %s2534_s5, %s2140_s19, %s2141_s4, %s2142_s15  }
 0x1d5 PF: > { %p1707_p4 = scmp.ge.s32.totalorder %s2132_s22, 2  ;;  %s1399_s25 = sand.u32 1, %s2080_s9  }
 0x1d6   : > { %p2657_p10 = scmp.ne.s32.totalorder %s2646_s27, 0  ;;  %s1400_s2 = scalar_lea.sflag [#allocation5], %s1399_s25 }
 0x1d8   : > { %p1703_p8 = pnand %p1707_p4, %p2657_p10 }
 0x1da   : > { %2075 = dma.done.wait (!%p1703_p8), %s1400_s2, 4096  }
 0x1db   : > { %2077 = vsyncadd (!%p1703_p8), %s1400_s2, 4294963200  ;;  %s21_s22 = sadd.s32 1, %s2132_s22   ;;  %s2659_s18 = sld [smem:[#allocation16_spill]] }
 0x1dc   : > { %p2563_p11 = scmp.ge.s32.totalorder %s21_s22, 6   ;;  %s2660_s19 = sld [smem:[#allocation13_spill]] }
 0x1dd   : > { %s2661_s27 = sld [smem:[#allocation14_spill]]  ;;  %s2662_s21 = sld [smem:[#allocation15_spill]] }
 0x1de   : > { %s2663_s9 = smov %s2084_s10  ;;  %s2664_s10 = smov %s2088_s11 }
 0x1df   : > { %s2665_s11 = smov %s2352_s30  ;;  %s2666_s12 = smov %s2096_s13 }
 0x1e0   : > { %s2667_s13 = smov %s2100_s14  ;;  %s2669_s15 = smov %s2108_s16 }
 0x1e1   : > { %s2668_s14 = smov %s2659_s18  ;;  %s2670_s16 = smov %s2112_s17 }
 0x1e2   : > { %s2671_s17 = smov %s2349_s0  ;;  %s2672_s18 = smov %s2124_s20 }
 0x1e3   : > { %s2673_s20 = smov %s2661_s27  ;;  %20 = sbr.rel (!%p2563_p11) target bundleno = 15 (0xf), region = 94 }
 0x1ea   :  { %1405 = vsyncpa [#allocation4], 1 }
 0x1eb   :  { %1407 = vsyncpa [#allocation4 + $0x1], 1 }
 0x1ec   :  { %1408 = vsyncpa [#allocation7], 1 }
 0x1ed   :  { %1410 = vsyncpa [#allocation7 + $0x1], 1 }
 0x1ee   :  { %1411 = vsyncpa [#allocation5], 1 }
 0x1ef   :  { %1413 = vsyncpa [#allocation5 + $0x1], 1 }

</bundles_post_ra>
